<compile_context>
chip_gen: v7x
topology: tpu7x:2x2x1
jax: 0.10.0
libtpu: 0.0.40
codegen_flags: <defaults>
</compile_context>

<pallas_src>
import functools

import numpy as np
import jax
import jax.numpy as jnp
from jax.experimental import pallas as pl
from jax.experimental.pallas import tpu as pltpu


# ----------------------------------------------------------------------------
# Host-side helpers: bilinear resize expressed as a dense linear operator.
# ----------------------------------------------------------------------------
def _resize_matrix_1d(out_size: int, in_size: int) -> np.ndarray:
    """F.interpolate(mode='bilinear', align_corners=False) along one axis."""
    i = np.arange(out_size, dtype=np.float64)
    src = (i + 0.5) * (in_size / out_size) - 0.5
    src = np.maximum(src, 0.0)
    i0 = np.floor(src).astype(np.int64)
    frac = src - i0
    i0 = np.minimum(i0, in_size - 1)
    i1 = np.minimum(i0 + 1, in_size - 1)
    m = np.zeros((out_size, in_size), dtype=np.float64)
    np.add.at(m, (np.arange(out_size), i0), 1.0 - frac)
    np.add.at(m, (np.arange(out_size), i1), frac)
    return m


def _resize_matrix_2d(out_hw, in_hw) -> np.ndarray:
    rh = _resize_matrix_1d(out_hw[0], in_hw[0])
    rw = _resize_matrix_1d(out_hw[1], in_hw[1])
    return np.kron(rh, rw)  # (out_h*out_w, in_h*in_w), row-major (h, w) flatten


def _round_up(x: int, m: int) -> int:
    return -(-x // m) * m


def _vmem_limit_bytes() -> int:
    """Per-generation scoped-VMEM request: ~3/4 of physical, capped at 96 MiB
    (≈96 MiB on v5e/v6e's 128 MiB cores, ≈48 MiB on v7x's 64 MiB cores)."""
    cap = 128 * 1024 * 1024
    try:
        info = pltpu.get_tpu_info()
        cap = int(getattr(info, "vmem_capacity_bytes", cap))
    except Exception:
        pass
    return int(max(min(cap * 3 // 4, 96 * 1024 * 1024), 32 * 1024 * 1024))


def _pick_hw_tile(hw, *, c, o, pp_pad, x_itemsize, with_shortcut, vmem_limit):
    """Largest legal hw tile (multiple of 128 dividing hw, or hw itself) whose
    per-call VMEM footprint fits in roughly half the scoped limit."""
    def vmem_need(t):
        call1 = (2 * c * t * x_itemsize        # x tile, double-buffered
                 + 2 * t * pp_pad * 2          # D^T tile, double-buffered
                 + c * pp_pad * 4              # f32 accumulator scratch
                 + 2 * o * pp_pad * 2)         # featT output block
        call2 = (2 * pp_pad * t * 2            # U^T tile
                 + 2 * o * pp_pad * 2          # featT
                 + 2 * o * t * 2               # bf16 output block
                 + 3 * o * t * 4)              # f32 fused / shortcut / out temporaries
        if with_shortcut:
            call2 += 2 * c * t * x_itemsize + 2 * o * c * 2
        return max(call1, call2)

    candidates = [hw] + [t for t in range(128, hw, 128) if hw % t == 0]
    fitting = [t for t in candidates if vmem_need(t) <= vmem_limit // 2]
    if fitting:
        return max(fitting)
    # TODO(synk): feature maps whose hw has no multiple-of-128 divisor can only be
    # processed as a single full-row block; this may exceed the VMEM budget.
    return min(candidates, key=vmem_need)


# ----------------------------------------------------------------------------
# Kernel 1: pooled phase.  Accumulate pooled^T = X(C,hw) @ D^T(hw,PP) over hw
# tiles (f32), then apply all branch 1x1 convs in one small f32 matmul and
# select the owning branch per stacked pooled-pixel column.
# ----------------------------------------------------------------------------
def _sppm_pool_kernel(x_ref, dT_ref, w_ref, b_ref, featT_ref, acc_ref, *, sel_bounds):
    t = pl.program_id(1)

    @pl.when(t == 0)
    def _init():
        acc_ref[...] = jnp.zeros_like(acc_ref)

    # pooled^T partial sum: (C, hw_tile) @ (hw_tile, PP) -> (C, PP), f32 accum.
    acc_ref[...] += jnp.dot(x_ref[0].astype(jnp.bfloat16), dT_ref[...],
                            preferred_element_type=jnp.float32)

    @pl.when(t == pl.num_programs(1) - 1)
    def _finalize():
        # All branch 1x1 convs at once, kept in f32 (tiny): (nb*O, C) @ (C, PP).
        featT_cat = jnp.dot(w_ref[...], acc_ref[...],
                            preferred_element_type=jnp.float32) + b_ref[...]
        featT_cat = jnp.maximum(featT_cat, 0.0)
        # Each stacked pooled-pixel column belongs to exactly one branch: keep that
        # branch's O-row block and zero the padded columns.
        o = featT_ref.shape[1]
        pp = acc_ref.shape[1]
        col = jax.lax.broadcasted_iota(jnp.int32, (1, pp), 1)
        featT = jnp.zeros((o, pp), jnp.float32)
        for p, (s, e) in enumerate(sel_bounds):
            blk = featT_cat[p * o:(p + 1) * o, :]
            featT = featT + jnp.where((col >= s) & (col < e), blk, 0.0)
        featT_ref[0] = featT.astype(featT_ref.dtype)


# ----------------------------------------------------------------------------
# Kernel 2: stacked bilinear upsample + optional shortcut + out_conv per hw tile,
# all in the transposed orientation (channels on M, hw on lanes).
# ----------------------------------------------------------------------------
def _sppm_out_kernel(*refs, with_shortcut: bool):
    if with_shortcut:
        featT_ref, uT_ref, x_ref, ws_ref, bs_ref, wo_ref, bo_ref, out_ref = refs
    else:
        featT_ref, uT_ref, wo_ref, bo_ref, out_ref = refs

    # All branches upsampled in one matmul: (O, PP) @ (PP, hw_tile) -> f32.
    fusedT = jnp.dot(featT_ref[0], uT_ref[...], preferred_element_type=jnp.float32)

    if with_shortcut:
        scT = jnp.dot(ws_ref[...], x_ref[0].astype(jnp.bfloat16),
                      preferred_element_type=jnp.float32) + bs_ref[...]
        fusedT = fusedT + jnp.maximum(scT, 0.0)

    outT = jnp.dot(wo_ref[...], fusedT.astype(jnp.bfloat16),
                   preferred_element_type=jnp.float32) + bo_ref[...]
    out_ref[0] = jnp.maximum(outT, 0.0).astype(out_ref.dtype)


# ----------------------------------------------------------------------------
# Wrapper: operand packing (stacking + transposition), two pallas_calls.
# ----------------------------------------------------------------------------
def sppm_forward(x_nchw, params, pool_sizes=(1, 2, 4), with_shortcut=False,
                 hw_tile=None, out_dtype=jnp.bfloat16):
    # TODO(synk): empty pool_sizes -> nn.Identity branch of the module not implemented.
    assert len(pool_sizes) > 0
    n, c, h, w = x_nchw.shape
    hw = h * w
    nb = len(pool_sizes)
    o = params["out_conv"][0].shape[1]
    pp_total = sum(p * p for p in pool_sizes)
    pp_pad = max(_round_up(pp_total, 32), 32)   # stacked pooled-pixel axis (sublane-aligned)

    vmem_limit = _vmem_limit_bytes()
    if hw_tile is None:
        hw_tile = _pick_hw_tile(hw, c=c, o=o, pp_pad=pp_pad,
                                x_itemsize=x_nchw.dtype.itemsize,
                                with_shortcut=with_shortcut, vmem_limit=vmem_limit)
    assert hw % hw_tile == 0 and (hw_tile == hw or hw_tile % 128 == 0), hw_tile
    num_t = hw // hw_tile

    # Channels-first throughout: NCHW is only reshaped (no transpose, no cast).
    x3 = x_nchw.reshape(n, c, hw)

    # Host-built constants: stacked transposed resize operators and concatenated
    # (transposed) branch conv weights.
    dT = np.zeros((hw, pp_pad), np.float32)      # D_p^T stacked along columns
    uT = np.zeros((pp_pad, hw), np.float32)      # U_p^T stacked along rows
    wT_cat = np.zeros((nb * o, c), np.float32)
    bT_cat = np.zeros((nb * o, 1), np.float32)
    bounds = []
    row0 = 0
    for i, (p, (wb, bb)) in enumerate(zip(pool_sizes, params["branches"])):
        pp = p * p
        dT[:, row0:row0 + pp] = _resize_matrix_2d((p, p), (h, w)).T
        uT[row0:row0 + pp, :] = _resize_matrix_2d((h, w), (p, p)).T
        wT_cat[i * o:(i + 1) * o, :] = np.asarray(wb).T
        bT_cat[i * o:(i + 1) * o, 0] = np.asarray(bb).reshape(-1)
        bounds.append((row0, row0 + pp))
        row0 += pp

    dT = jnp.asarray(dT, jnp.bfloat16)
    uT = jnp.asarray(uT, jnp.bfloat16)
    wT_cat = jnp.asarray(wT_cat, jnp.float32)    # branch convs kept in f32 (tiny)
    bT_cat = jnp.asarray(bT_cat, jnp.float32)

    wo, bo = params["out_conv"]
    woT = jnp.asarray(np.asarray(wo).T, jnp.bfloat16)             # (o, o)
    boT = jnp.asarray(np.asarray(bo).reshape(o, 1), jnp.float32)  # (o, 1)

    # ---- call 1: pooled phase (hw-tile reduction) + all branch 1x1 convs --------
    cost1 = pl.CostEstimate(
        flops=int(n * (2 * c * hw * pp_pad + 2 * nb * o * c * pp_pad)),
        transcendentals=0,
        bytes_accessed=int(x_nchw.nbytes + n * hw * pp_pad * 2
                           + wT_cat.nbytes + bT_cat.nbytes + n * o * pp_pad * 2))
    featT = pl.pallas_call(
        functools.partial(_sppm_pool_kernel, sel_bounds=tuple(bounds)),
        grid=(n, num_t),
        in_specs=[
            pl.BlockSpec((1, c, hw_tile), lambda nn, t: (nn, 0, t)),
            pl.BlockSpec((hw_tile, pp_pad), lambda nn, t: (t, 0)),
            # TODO(synk): pipeline_mode=pl.Buffered(1) on these constant operands
            # once single-buffering is safe; they are tiny here.
            pl.BlockSpec((nb * o, c), lambda nn, t: (0, 0)),
            pl.BlockSpec((nb * o, 1), lambda nn, t: (0, 0)),
        ],
        out_specs=pl.BlockSpec((1, o, pp_pad), lambda nn, t: (nn, 0, 0)),
        out_shape=jax.ShapeDtypeStruct((n, o, pp_pad), jnp.bfloat16),
        scratch_shapes=[pltpu.VMEM((c, pp_pad), jnp.float32)],
        compiler_params=pltpu.CompilerParams(
            dimension_semantics=("parallel", "arbitrary"),
            vmem_limit_bytes=vmem_limit),
        cost_estimate=cost1,
    )(x3, dT, wT_cat, bT_cat)

    # ---- call 2: upsample + (shortcut) + out_conv, tiled over hw ----------------
    operands = [featT, uT]
    in_specs = [
        pl.BlockSpec((1, o, pp_pad), lambda t, nn: (nn, 0, 0)),
        pl.BlockSpec((pp_pad, hw_tile), lambda t, nn: (0, t)),
    ]
    sc_flops = 0
    if with_shortcut:
        ws, bs = params["shortcut"]
        wsT = jnp.asarray(np.asarray(ws).T, jnp.bfloat16)             # (o, c)
        bsT = jnp.asarray(np.asarray(bs).reshape(o, 1), jnp.float32)  # (o, 1)
        operands += [x3, wsT, bsT]
        in_specs += [
            pl.BlockSpec((1, c, hw_tile), lambda t, nn: (nn, 0, t)),
            pl.BlockSpec((o, c), lambda t, nn: (0, 0)),
            pl.BlockSpec((o, 1), lambda t, nn: (0, 0)),
        ]
        sc_flops = 2 * o * c * hw
    operands += [woT, boT]
    in_specs += [
        pl.BlockSpec((o, o), lambda t, nn: (0, 0)),
        pl.BlockSpec((o, 1), lambda t, nn: (0, 0)),
    ]

    cost2 = pl.CostEstimate(
        flops=int(n * (2 * o * pp_pad * hw + sc_flops + 2 * o * o * hw)),
        transcendentals=0,
        bytes_accessed=int(pp_pad * hw * 2 + n * num_t * o * pp_pad * 2
                           + (x_nchw.nbytes if with_shortcut else 0)
                           + n * o * hw * np.dtype(out_dtype).itemsize))
    out3 = pl.pallas_call(
        functools.partial(_sppm_out_kernel, with_shortcut=with_shortcut),
        # Batch innermost so the U^T tile and weight operands keep a constant block
        # index across the inner loop (Pallas skips the redundant re-DMAs).
        grid=(num_t, n),
        in_specs=in_specs,
        out_specs=pl.BlockSpec((1, o, hw_tile), lambda t, nn: (nn, 0, t)),
        out_shape=jax.ShapeDtypeStruct((n, o, hw), out_dtype),
        compiler_params=pltpu.CompilerParams(
            dimension_semantics=("parallel", "parallel"),
            vmem_limit_bytes=vmem_limit),
        cost_estimate=cost2,
    )(*operands)

    # NCHW output directly: no slice, no transpose, no extra copy.
    return out3.reshape(n, o, h, w)


# ----------------------------------------------------------------------------
# Parameter construction (deterministic, eval-BatchNorm folded into the 1x1 conv).
# ----------------------------------------------------------------------------
def _make_convnormact_params(key, c_in, c_out, eps=1e-5):
    k1, k2, k3, k4, k5 = jax.random.split(key, 5)
    w = 0.1 * jax.random.normal(k1, (c_in, c_out), jnp.float32)  # conv, bias=False
    gamma = 1.0 + 0.1 * jax.random.normal(k2, (c_out,), jnp.float32)
    beta = 0.1 * jax.random.normal(k3, (c_out,), jnp.float32)
    mean = 0.1 * jax.random.normal(k4, (c_out,), jnp.float32)
    var = jnp.abs(jax.random.normal(k5, (c_out,), jnp.float32)) + 0.5
    scale = gamma / jnp.sqrt(var + eps)
    eff_w = w * scale[None, :]
    eff_b = (beta - mean * scale).reshape(1, c_out)
    return eff_w, eff_b


def make_sppm_params(key, in_channels, out_channels, pool_sizes, with_shortcut=False):
    keys = jax.random.split(key, len(pool_sizes) + 2)
    params = {
        "branches": [
            _make_convnormact_params(keys[i], in_channels, out_channels)
            for i in range(len(pool_sizes))
        ],
        "out_conv": _make_convnormact_params(keys[-1], out_channels, out_channels),
    }
    if with_shortcut:
        params["shortcut"] = _make_convnormact_params(keys[-2], in_channels, out_channels)
    return params


# ----------------------------------------------------------------------------
# Pure-JAX reference. mimic_bf16=True mirrors the kernel's precision scheme
# (bf16 operands for the large matmuls, f32 branch conv, bf16 output) so the
# structural correctness check can be reasonably tight.
# ----------------------------------------------------------------------------
def sppm_reference(x_nchw, params, pool_sizes=(1, 2, 4), with_shortcut=False,
                   mimic_bf16=False):
    if mimic_bf16:
        cast = lambda a: a.astype(jnp.bfloat16).astype(jnp.float32)
    else:
        cast = lambda a: a.astype(jnp.float32)
    n, c, h, w = x_nchw.shape
    hw = h * w
    x = cast(jnp.transpose(x_nchw, (0, 2, 3, 1)).reshape(n, hw, c))
    o = params["out_conv"][0].shape[1]
    fused = jnp.zeros((n, hw, o), jnp.float32)
    for p, (wb, bb) in zip(pool_sizes, params["branches"]):
        d = cast(jnp.asarray(_resize_matrix_2d((p, p), (h, w)), jnp.float32))
        u = cast(jnp.asarray(_resize_matrix_2d((h, w), (p, p)), jnp.float32))
        pooled = jnp.einsum("ph,nhc->npc", d, x)
        feat = jnp.maximum(
            jnp.einsum("npc,co->npo", pooled, wb.astype(jnp.float32)) + bb[None], 0.0)
        fused = fused + jnp.einsum("hp,npo->nho", u, cast(feat))
    if with_shortcut:
        ws, bs = params["shortcut"]
        sc = jnp.einsum("nhc,co->nho", x, cast(ws)) + bs[None]
        fused = fused + jnp.maximum(sc, 0.0)
    wo, bo = params["out_conv"]
    out = jnp.maximum(
        jnp.einsum("nho,op->nhp", cast(fused), cast(wo)) + bo[None], 0.0)
    if mimic_bf16:
        out = out.astype(jnp.bfloat16).astype(jnp.float32)
    return out.reshape(n, h, w, o).transpose(0, 3, 1, 2)


if __name__ == "__main__":
    key = jax.random.PRNGKey(0)
    kx, kp1, kp2 = jax.random.split(key, 3)

    N, C, H, W = 2, 8, 16, 16
    OUT = 16
    POOL_SIZES = (1, 2, 4)

    x = jax.random.normal(kx, (N, C, H, W), jnp.float32)

    # Second config forces hw_tile=128 to exercise the tiled hw reduction path.
    for with_shortcut, kp, hw_tile in ((False, kp1, None), (True, kp2, 128)):
        params = make_sppm_params(kp, C, OUT, POOL_SIZES, with_shortcut=with_shortcut)
        out = sppm_forward(x, params, pool_sizes=POOL_SIZES,
                           with_shortcut=with_shortcut, hw_tile=hw_tile)
        out = jax.block_until_ready(out)
        assert out.shape == (N, OUT, H, W), out.shape
        out_f32 = np.asarray(out.astype(jnp.float32))

        # Tight-ish check vs a reference mirroring the kernel's precision scheme.
        ref_bf16 = np.asarray(
            sppm_reference(x, params, POOL_SIZES, with_shortcut, mimic_bf16=True))
        np.testing.assert_allclose(out_f32, ref_bf16, rtol=1e-2, atol=1e-2)

        # Looser check vs the pure-f32 module math (bounds bf16 approximation error).
        ref_f32 = np.asarray(
            sppm_reference(x, params, POOL_SIZES, with_shortcut, mimic_bf16=False))
        np.testing.assert_allclose(out_f32, ref_f32, rtol=5e-2, atol=5e-2)

    print("KERNEL_OK")
</pallas_src>

<mosaic_0001>
module attributes {stable_mosaic.version = 11 : i64} {
  func.func @_sppm_pool_kernel(%arg0: i32, %arg1: i32, %arg2: memref<1x8x256xf32, #tpu.memory_space<vmem>>, %arg3: memref<256x32xbf16, #tpu.memory_space<vmem>>, %arg4: memref<48x8xf32, #tpu.memory_space<vmem>>, %arg5: memref<48x1xf32, #tpu.memory_space<vmem>>, %arg6: memref<1x16x32xbf16, #tpu.memory_space<vmem>>, %arg7: memref<8x32xf32, #tpu.memory_space<vmem>>) attributes {dimension_semantics = [#tpu.dimension_semantics<parallel>, #tpu.dimension_semantics<arbitrary>], iteration_bounds = array<i64: 2, 1>, scalar_prefetch = 0 : i64, scratch_operands = 1 : i64, tpu.core_type = #tpu.core_type<tc>, window_params = [{transform_indices = @transform_0, window_bounds = array<i64: 1, 8, 256>}, {transform_indices = @transform_1, window_bounds = array<i64: 256, 32>}, {pipeline_mode = #tpu.pipeline_mode<synchronous>, transform_indices = @transform_2, window_bounds = array<i64: 48, 8>}, {pipeline_mode = #tpu.pipeline_mode<synchronous>, transform_indices = @transform_3, window_bounds = array<i64: 48, 1>}, {transform_indices = @transform_4, window_bounds = array<i64: 1, 16, 32>}]} {
    %c0_i32 = arith.constant 0 : i32
    %0 = arith.cmpi eq, %arg1, %c0_i32 : i32
    %1 = arith.extui %0 : i1 to i32
    %c0_i32_0 = arith.constant 0 : i32
    %2 = arith.cmpi ne, %1, %c0_i32_0 : i32
    scf.if %2 {
      %cst_11 = arith.constant 0.000000e+00 : f32
      %14 = vector.broadcast %cst_11 : f32 to vector<8x32xf32>
      %c0_12 = arith.constant 0 : index
      %c0_13 = arith.constant 0 : index
      %15 = vector.load %arg7[%c0_12, %c0_13] : memref<8x32xf32, #tpu.memory_space<vmem>>, vector<8x32xf32>
      tpu.vector_store %arg7[%c0_12, %c0_13], %14 {strides = array<i32>} : memref<8x32xf32, #tpu.memory_space<vmem>>, vector<8x32xf32>,
    } else {
    }
    %c0 = arith.constant 0 : index
    %c0_1 = arith.constant 0 : index
    %3 = vector.load %arg7[%c0, %c0_1] : memref<8x32xf32, #tpu.memory_space<vmem>>, vector<8x32xf32>
    %c0_2 = arith.constant 0 : index
    %c0_3 = arith.constant 0 : index
    %c0_4 = arith.constant 0 : index
    %4 = vector.load %arg2[%c0_2, %c0_3, %c0_4] : memref<1x8x256xf32, #tpu.memory_space<vmem>>, vector<1x8x256xf32>
    %5 = vector.shape_cast %4 : vector<1x8x256xf32> to vector<8x256xf32>
    %6 = arith.truncf %5 : vector<8x256xf32> to vector<8x256xbf16>
    %c0_5 = arith.constant 0 : index
    %c0_6 = arith.constant 0 : index
    %7 = vector.load %arg3[%c0_5, %c0_6] : memref<256x32xbf16, #tpu.memory_space<vmem>>, vector<256x32xbf16>
    %cst = arith.constant dense<0.000000e+00> : vector<8x32xf32>
    %8 = tpu.matmul %6, %7, %cst {dimension_numbers = #tpu.dot_dimension_numbers<[1], [0], [0], [1], [0, 0, 1, 1], [], []>} : vector<8x256xbf16>, vector<256x32xbf16>, vector<8x32xf32> -> vector<8x32xf32>
    %9 = arith.addf %3, %8 : vector<8x32xf32>
    %c0_7 = arith.constant 0 : index
    %c0_8 = arith.constant 0 : index
    %10 = vector.load %arg7[%c0_7, %c0_8] : memref<8x32xf32, #tpu.memory_space<vmem>>, vector<8x32xf32>
    tpu.vector_store %arg7[%c0_7, %c0_8], %9 {strides = array<i32>} : memref<8x32xf32, #tpu.memory_space<vmem>>, vector<8x32xf32>,
    %c0_i32_9 = arith.constant 0 : i32
    %11 = arith.cmpi eq, %arg1, %c0_i32_9 : i32
    %12 = arith.extui %11 : i1 to i32
    %c0_i32_10 = arith.constant 0 : i32
    %13 = arith.cmpi ne, %12, %c0_i32_10 : i32
    scf.if %13 {
      %c0_11 = arith.constant 0 : index
      %c0_12 = arith.constant 0 : index
      %14 = vector.load %arg4[%c0_11, %c0_12] : memref<48x8xf32, #tpu.memory_space<vmem>>, vector<48x8xf32>
      %c0_13 = arith.constant 0 : index
      %c0_14 = arith.constant 0 : index
      %15 = vector.load %arg7[%c0_13, %c0_14] : memref<8x32xf32, #tpu.memory_space<vmem>>, vector<8x32xf32>
      %cst_15 = arith.constant dense<0.000000e+00> : vector<48x32xf32>
      %16 = tpu.matmul %14, %15, %cst_15 {dimension_numbers = #tpu.dot_dimension_numbers<[1], [0], [0], [1], [0, 0, 1, 1], [], []>} : vector<48x8xf32>, vector<8x32xf32>, vector<48x32xf32> -> vector<48x32xf32>
      %c0_16 = arith.constant 0 : index
      %c0_17 = arith.constant 0 : index
      %17 = vector.load %arg5[%c0_16, %c0_17] : memref<48x1xf32, #tpu.memory_space<vmem>>, vector<48x1xf32>
      %18 = vector.broadcast %17 : vector<48x1xf32> to vector<48x32xf32>
      %19 = arith.addf %16, %18 : vector<48x32xf32>
      %cst_18 = arith.constant 0.000000e+00 : f32
      %20 = vector.broadcast %cst_18 : f32 to vector<48x32xf32>
      %21 = arith.maximumf %19, %20 : vector<48x32xf32>
      %22 = tpu.iota {dimensions = array<i32: 1>} : vector<1x32xi32>
      %cst_19 = arith.constant 0.000000e+00 : f32
      %23 = vector.broadcast %cst_19 : f32 to vector<16x32xf32>
      %24 = vector.extract_strided_slice %21 {offsets = [0, 0], sizes = [16, 32], strides = [1, 1]} : vector<48x32xf32> to vector<16x32xf32>
      %c0_i32_20 = arith.constant 0 : i32
      %25 = vector.broadcast %c0_i32_20 : i32 to vector<1x32xi32>
      %26 = arith.cmpi sge, %22, %25 : vector<1x32xi32>
      %c1_i32 = arith.constant 1 : i32
      %27 = vector.broadcast %c1_i32 : i32 to vector<1x32xi32>
      %28 = arith.cmpi slt, %22, %27 : vector<1x32xi32>
      %29 = arith.andi %26, %28 : vector<1x32xi1>
      %cst_21 = arith.constant 0.000000e+00 : f32
      %30 = vector.shape_cast %29 : vector<1x32xi1> to vector<1x32xi1>
      %31 = vector.broadcast %30 : vector<1x32xi1> to vector<16x32xi1>
      %32 = vector.broadcast %cst_21 : f32 to vector<16x32xf32>
      %33 = arith.select %31, %24, %32 : vector<16x32xi1>, vector<16x32xf32>
      %34 = arith.addf %23, %33 : vector<16x32xf32>
      %35 = vector.extract_strided_slice %21 {offsets = [16, 0], sizes = [16, 32], strides = [1, 1]} : vector<48x32xf32> to vector<16x32xf32>
      %c1_i32_22 = arith.constant 1 : i32
      %36 = vector.broadcast %c1_i32_22 : i32 to vector<1x32xi32>
      %37 = arith.cmpi sge, %22, %36 : vector<1x32xi32>
      %c5_i32 = arith.constant 5 : i32
      %38 = vector.broadcast %c5_i32 : i32 to vector<1x32xi32>
      %39 = arith.cmpi slt, %22, %38 : vector<1x32xi32>
      %40 = arith.andi %37, %39 : vector<1x32xi1>
      %cst_23 = arith.constant 0.000000e+00 : f32
      %41 = vector.shape_cast %40 : vector<1x32xi1> to vector<1x32xi1>
      %42 = vector.broadcast %41 : vector<1x32xi1> to vector<16x32xi1>
      %43 = vector.broadcast %cst_23 : f32 to vector<16x32xf32>
      %44 = arith.select %42, %35, %43 : vector<16x32xi1>, vector<16x32xf32>
      %45 = arith.addf %34, %44 : vector<16x32xf32>
      %46 = vector.extract_strided_slice %21 {offsets = [32, 0], sizes = [16, 32], strides = [1, 1]} : vector<48x32xf32> to vector<16x32xf32>
      %c5_i32_24 = arith.constant 5 : i32
      %47 = vector.broadcast %c5_i32_24 : i32 to vector<1x32xi32>
      %48 = arith.cmpi sge, %22, %47 : vector<1x32xi32>
      %c21_i32 = arith.constant 21 : i32
      %49 = vector.broadcast %c21_i32 : i32 to vector<1x32xi32>
      %50 = arith.cmpi slt, %22, %49 : vector<1x32xi32>
      %51 = arith.andi %48, %50 : vector<1x32xi1>
      %cst_25 = arith.constant 0.000000e+00 : f32
      %52 = vector.shape_cast %51 : vector<1x32xi1> to vector<1x32xi1>
      %53 = vector.broadcast %52 : vector<1x32xi1> to vector<16x32xi1>
      %54 = vector.broadcast %cst_25 : f32 to vector<16x32xf32>
      %55 = arith.select %53, %46, %54 : vector<16x32xi1>, vector<16x32xf32>
      %56 = arith.addf %45, %55 : vector<16x32xf32>
      %57 = arith.truncf %56 : vector<16x32xf32> to vector<16x32xbf16>
      %c0_26 = arith.constant 0 : index
      %c0_27 = arith.constant 0 : index
      %c0_28 = arith.constant 0 : index
      %58 = vector.load %arg6[%c0_26, %c0_27, %c0_28] : memref<1x16x32xbf16, #tpu.memory_space<vmem>>, vector<1x16x32xbf16>
      %59 = vector.shape_cast %58 : vector<1x16x32xbf16> to vector<16x32xbf16>
      %60 = vector.shape_cast %57 : vector<16x32xbf16> to vector<1x16x32xbf16>
      tpu.vector_store %arg6[%c0_26, %c0_27, %c0_28], %60 {strides = array<i32>} : memref<1x16x32xbf16, #tpu.memory_space<vmem>>, vector<1x16x32xbf16>,
    } else {
    }
    return
  }
  func.func @transform_0(%arg0: i32, %arg1: i32) -> (i32, i32, i32) {
    %c0_i32 = arith.constant 0 : i32
    %c0_i32_0 = arith.constant 0 : i32
    return %arg0, %c0_i32, %arg1 : i32, i32, i32
  }
  func.func @transform_1(%arg0: i32, %arg1: i32) -> (i32, i32) {
    %c0_i32 = arith.constant 0 : i32
    %c0_i32_0 = arith.constant 0 : i32
    return %arg1, %c0_i32 : i32, i32
  }
  func.func @transform_2(%arg0: i32, %arg1: i32) -> (i32, i32) {
    %c0_i32 = arith.constant 0 : i32
    %c0_i32_0 = arith.constant 0 : i32
    %c0_i32_1 = arith.constant 0 : i32
    return %c0_i32, %c0_i32_0 : i32, i32
  }
  func.func @transform_3(%arg0: i32, %arg1: i32) -> (i32, i32) {
    %c0_i32 = arith.constant 0 : i32
    %c0_i32_0 = arith.constant 0 : i32
    %c0_i32_1 = arith.constant 0 : i32
    return %c0_i32, %c0_i32_0 : i32, i32
  }
  func.func @transform_4(%arg0: i32, %arg1: i32) -> (i32, i32, i32) {
    %c0_i32 = arith.constant 0 : i32
    %c0_i32_0 = arith.constant 0 : i32
    %c0_i32_1 = arith.constant 0 : i32
    return %arg0, %c0_i32, %c0_i32_0 : i32, i32, i32
  }
}

</mosaic_0001>

<bundles_post_ra>
// kernel: tpu_custom_call.1
= control target key start
LH: loop header
LB: loop body
LE: loop exit
PB: predicated region body
PF: predicated region fallthrough
CT: control target
= control target key end

     0   :  { %s1555_s0 = inlined_call_operand.hbm [shape: f32[2,8,256], index: 0, kind: input, shape index: {}]   ;;  %s1556_s1 = inlined_call_operand.hbm [shape: bf16[256,32], index: 1, kind: input, shape index: {}]   ;;  %s1557_s2 = inlined_call_operand.hbm [shape: f32[48,8], index: 2, kind: input, shape index: {}]   ;;  %s1558_s3 = inlined_call_operand.hbm [shape: f32[48,1], index: 3, kind: input, shape index: {}]   ;;  %s1559_s4 = inlined_call_operand.hbm [shape: bf16[2,16,32], index: 4, kind: output, shape index: {}]  }
   0x1   :  { %1564 = sst [smem:[#allocation16_spill]] %s1556_s1 }
   0x2   :  { %9 = vsyncpa [#allocation4], 0 }
   0x3   :  { %11 = vsyncpa [#allocation4 + $0x1], 0 }
   0x4   :  { %12 = vsyncpa [#allocation7], 0 }
   0x5   :  { %13 = vsyncpa [#allocation10], 0 }
   0x6   :  { %14 = vsyncpa [#allocation5], 0 }
   0x7   :  { %16 = vsyncpa [#allocation5 + $0x1], 0  ;;  %s1254_s15 = smov 0   ;;  %s1256_s16 = smov 0  }
   0x8   :  { %s1258_s17 = smov 0   ;;  %s1260_s18 = smov 0  }
   0x9   :  { %s1262_s19 = smov 0   ;;  %s1264_s20 = smov 0  }
   0xa LB: > { %s802_s21 = sadd.s32 4294967295, %s1214_s20   ;;  %s803_s22 = sadd.s32 4294967294, %s1214_s20   ;;  %s1214_s20 = sphi %s1264_s20, %s22_s20   ;;  %s1210_s19 = sphi %s1262_s19, %s1588_s19   ;;  %s1206_s18 = sphi %s1260_s18, %s1587_s18   ;;  %s1202_s17 = sphi %s1258_s17, %s1586_s17   ;;  %s1198_s16 = sphi %s1256_s16, %s1585_s16   ;;  %s1194_s15 = sphi %s1254_s15, %s1584_s15  }
   0xb   : > { %p56_p0 = scmp.ne.s32.totalorder %s1198_s16, %s1194_s15  ;;  %p1288_p1 = scmp.eq.s32.totalorder %s802_s21, 0 }
   0xc   : > { %p1292_p2 = scmp.eq.s32.totalorder %s802_s21, 1  ;;  %p154_p3 = scmp.eq.s32.totalorder %s803_s22, 1 }
   0xd   : > { %s1565_s23 = scalar_select %p1288_p1, 1, 0 }
   0xe   : > { %s1566_s24 = scalar_select %p1292_p2, 1, 0 }
   0xf   : > { %p1298_p4 = por %p1288_p1, %p56_p0  ;;  %p804_p5 = scmp.ge.s32.totalorder %s1214_s20, 1 }
  0x10   : > { %p1303_p6 = por %p154_p3, %p56_p0  ;;  %p161_p7 = scmp.lt.s32.totalorder %s1214_s20, 3 }
  0x11   : > { %s1567_s25 = scalar_select %p1298_p4, 1, 0 }
  0x12   : > { %s1568_s26 = scalar_select %p1303_p6, 1, 0 }
  0x13   : > { %p1308_p8 = pnand %p804_p5, %p161_p7  ;;  %s1216_s28 = smov [#allocation6]  }
  0x14   : > { %s176_s29 = sshll.u32 %s1216_s28, 4  ;;  %s1217_s5 = smov [#allocation8]   ;;  %s1312_s29 = int_to_ptr.vmem [resolvable:$true] %s176_s29 }
  0x15   : > { %s1569_s27 = scalar_select %p1308_p8, 1, 0 }
  0x16   : > { %p907_p9 = pneg %p1308_p8  ;;  %s189_s6 = sshll.u32 %s1217_s5, 4  ;;  %s1323_s6 = int_to_ptr.vmem [resolvable:$true] %s189_s6 }
  0x17   : > { %s1571_s1 = sld [smem:[#allocation16_spill]] }
  0x18   : > { %p1319_p11 = pnand %p907_p9, %p1288_p1 }
  0x1a   : > { %p1333_p13 = pneg %p1319_p11 }
  0x1d   : > { %s1010_s9 = scalar_lea.hbm %s1571_s1, 2048 }
  0x1e   : > { %p1011_p12 = scmp.ne.s32.totalorder %s1571_s1, %s1010_s9  ;;  %p1017_p5 = scmp.lt.u32.totalorder %s1010_s9, %s1571_s1 }
  0x20   : > { %p1013_p0 = pnand %p1333_p13, %p1011_p12 }
  0x22   : > { %p1014_p3 = pneg %p1013_p0 }
  0x24   : > { %p1019_p7 = pnand %p1017_p5, %p1014_p3 }
  0x26   : > { %1022 = shalt.err (!%p1019_p7)
}
  0x27   : > { %s1023_s21 = scalar_lea.vmem %s1312_s29, 2048  ;;  %p1031_p1 = scmp.lt.s32.totalorder %s1312_s29, %s1312_s29 }
  0x28   : > { %p1024_p9 = scmp.ne.s32.totalorder %s1312_s29, %s1023_s21  ;;  %p1032_p4 = scmp.lt.s32.totalorder %s1023_s21, %s1023_s21 }
  0x2a   : > { %p1026_p10 = pnand %p1024_p9, %p1333_p13  ;;  %p1033_p12 = por %p1032_p4, %p1031_p1 }
  0x2c   : > { %p1027_p6 = pneg %p1026_p10 }
  0x2e   : > { %p1034_p0 = pnand %p1033_p12, %p1027_p6 }
  0x30   : > { %1037 = shalt.err (!%p1034_p0)
}
  0x31   : > { %s1218_s22 = smov 64   ;;  %s1219_s28 = smov 4  }
  0x32   : > { %910 = dma.hbm_to_vmem [thread:$0]  (!%p1319_p11), %s1571_s1, 2048, %s1312_s29, [#allocation7], %s1218_s22, %s1218_s22, %s1219_s28  }
  0x33   : > { %s1038_s10 = scalar_lea.hbm %s1557_s2, 768 }
  0x34   : > { %p1039_p1 = scmp.ne.s32.totalorder %s1557_s2, %s1038_s10  ;;  %p1045_p10 = scmp.lt.u32.totalorder %s1038_s10, %s1557_s2 }
  0x36   : > { %p1041_p4 = pnand %p1039_p1, %p1333_p13 }
  0x38   : > { %p1042_p6 = pneg %p1041_p4 }
  0x3a   : > { %p1047_p3 = pnand %p1045_p10, %p1042_p6 }
  0x3c   : > { %1050 = shalt.err (!%p1047_p3)
}
  0x3d   : > { %s1051_s29 = scalar_lea.vmem %s1323_s6, 768  ;;  %p1059_p12 = scmp.lt.s32.totalorder %s1323_s6, %s1323_s6 }
  0x3e   : > { %p1052_p5 = scmp.ne.s32.totalorder %s1323_s6, %s1051_s29  ;;  %p1060_p0 = scmp.lt.s32.totalorder %s1051_s29, %s1051_s29 }
  0x40   : > { %p1054_p7 = pnand %p1052_p5, %p1333_p13  ;;  %p1061_p1 = por %p1060_p0, %p1059_p12 }
  0x42   : > { %p1055_p9 = pneg %p1054_p7 }
  0x44   : > { %p1062_p4 = pnand %p1061_p1, %p1055_p9 }
  0x46   : > { %1065 = shalt.err (!%p1062_p4)
}
  0x47   : > { %s1220_s22 = smov 128   ;;  %s1221_s28 = smov 8  }
  0x48   : > { %913 = dma.hbm_to_vmem [thread:$0]  (!%p1319_p11), %s1557_s2, 768, %s1323_s6, [#allocation7], %s1220_s22, %s1220_s22, %s1221_s28  }
  0x49   : > { %s1222_s8 = smov [#allocation9]   ;;  %s1066_s13 = scalar_lea.hbm %s1558_s3, 768 }
  0x4a   : > { %s202_s9 = sshll.u32 %s1222_s8, 4  ;;  %p1067_p6 = scmp.ne.s32.totalorder %s1558_s3, %s1066_s13  ;;  %s203_s9 = int_to_ptr.vmem [resolvable:$true] %s202_s9 }
  0x4b   : > { %p1073_p5 = scmp.lt.u32.totalorder %s1066_s13, %s1558_s3 }
  0x4c   : > { %p1069_p10 = pnand %p1067_p6, %p1333_p13 }
  0x4e   : > { %p1070_p3 = pneg %p1069_p10 }
  0x50   : > { %p1075_p7 = pnand %p1073_p5, %p1070_p3 }
  0x52   : > { %1078 = shalt.err (!%p1075_p7)
}
  0x53   : > { %s1079_s6 = scalar_lea.vmem %s203_s9, 768  ;;  %p1087_p1 = scmp.lt.s32.totalorder %s203_s9, %s203_s9 }
  0x54   : > { %p1080_p9 = scmp.ne.s32.totalorder %s203_s9, %s1079_s6  ;;  %p1088_p4 = scmp.lt.s32.totalorder %s1079_s6, %s1079_s6 }
  0x56   : > { %p1082_p12 = pnand %p1080_p9, %p1333_p13  ;;  %p1089_p8 = por %p1088_p4, %p1087_p1 }
  0x58   : > { %p1083_p0 = pneg %p1082_p12 }
  0x5a   : > { %p1090_p2 = pnand %p1089_p8, %p1083_p0 }
  0x5c   : > { %1093 = shalt.err (!%p1090_p2)
}
  0x5d   : > { %916 = dma.hbm_to_vmem [thread:$0]  (!%p1319_p11), %s1558_s3, 768, %s203_s9, [#allocation10], %s1220_s22, %s1220_s22, %s1221_s28  }
  0x5e   : > { %s34_s1 = sadd.s32 1, %s1210_s19  ;;  %s43_s12 = sadd.s32 1, %s1202_s17 }
  0x5f   : > { %p36_p8 = scmp.ge.s32.totalorder %s34_s1, 2  ;;  %p50_p2 = scmp.ne.s32.totalorder %s1202_s17, %s1198_s16 }
  0x60   : > { %p51_p13 = scmp.eq.s32.totalorder %s1214_s20, 0  ;;  %p1574_p10 = scmp.ne.s32.totalorder %s1566_s24, 0 }
  0x61   : > { %s1590_s1 = smov (%p36_p8, %s34_s1), 0  ;;  %p928_p11 = scmp.lt.s32.totalorder %s1214_s20, 2 }
  0x62   : > { %p1402_p6 = por %p51_p13, %p50_p2  ;;  %p1408_p3 = por %p1574_p10, %p50_p2 }
  0x63   : > { %s38_s10 = ssub.s32 %s1210_s19, %s1590_s1  ;;  %s216_s22 = sand.u32 1, %s1202_s17  }
  0x64   : > { %p41_p5 = scmp.eq.s32.totalorder %s38_s10, 0  ;;  %s809_s28 = sshll.u32 %s216_s22, 4 }
  0x65   : > { %s847_s11 = sshll.u32 %s1210_s19, 8  ;;  %s220_s24 = scalar_lea.vmem [#allocation3], %s809_s28 }
  0x66   : > { %s1417_s9 = scalar_select %p41_p5, %s1202_s17, %s43_s12  }
  0x67   : > { %s1423_s21 = scalar_lea.hbm %s1555_s0, %s847_s11  ;;  %s230_s29 = sshll.u32 %s220_s24, 4  ;;  %s1425_s29 = int_to_ptr.vmem [resolvable:$true] %s230_s29 }
  0x68   : > { %p1429_p7 = pnand %p928_p11, %p1402_p6  ;;  %s217_s5 = scalar_lea.sflag [#allocation4], %s216_s22 }
  0x69   : > { %s1094_s7 = scalar_lea.hbm %s1423_s21, 256  ;;  %s1099_s28 = scalar_lea.hbm %s1555_s0, 512 }
  0x6a   : > { %p1095_p9 = scmp.ne.s32.totalorder %s1423_s21, %s1094_s7  ;;  %p1096_p12 = pneg %p1429_p7 }
  0x6b   : > { %p1100_p4 = scmp.lt.u32.totalorder %s1423_s21, %s1555_s0  ;;  %p1101_p8 = scmp.lt.u32.totalorder %s1099_s28, %s1094_s7 }
  0x6c   : > { %p1097_p0 = pnand %p1096_p12, %p1095_p9  ;;  %p1103_p13 = scmp.lt.u32.totalorder %s1094_s7, %s1423_s21 }
  0x6d   : > { %p1102_p2 = por %p1101_p8, %p1100_p4 }
  0x6e   : > { %p1098_p1 = pneg %p1097_p0 }
  0x6f   : > { %p1104_p6 = por %p1103_p13, %p1102_p2 }
  0x71   : > { %p1105_p10 = pnand %p1104_p6, %p1098_p1 }
  0x73   : > { %1108 = shalt.err (!%p1105_p10)
}
  0x74   : > { %s1109_s22 = scalar_lea.vmem %s1425_s29, 256  ;;  %s1223_s13 = smov [#allocation3]  }
  0x75   : > { %p1110_p11 = scmp.ne.s32.totalorder %s1425_s29, %s1109_s22  ;;  %s1114_s14 = sshll.u32 %s1223_s13, 4  ;;  %s1115_s14 = int_to_ptr.vmem [resolvable:$false] %s1114_s14 }
  0x76   : > { %s1116_s24 = scalar_lea.vmem %s1115_s14, 512  ;;  %p1117_p0 = scmp.lt.s32.totalorder %s1425_s29, %s1115_s14 }
  0x77   : > { %p1112_p5 = pnand %p1110_p11, %p1096_p12  ;;  %p1118_p4 = scmp.lt.s32.totalorder %s1116_s24, %s1109_s22 }
  0x79   : > { %p1113_p9 = pneg %p1112_p5  ;;  %p1119_p8 = por %p1118_p4, %p1117_p0 }
  0x7b   : > { %p1120_p2 = pnand %p1119_p8, %p1113_p9 }
  0x7d   : > { %1123 = shalt.err (!%p1120_p2)
}
  0x7e   : > { %920 = dma.hbm_to_vmem [thread:$0]  (!%p1429_p7), %s1423_s21, 256, %s1425_s29, %s217_s5  }
  0x7f   : > { %p1577_p1 = scmp.ne.s32.totalorder %s1569_s27, 0 }
  0x80   : > { %s1461_s7 = sand.u32 (!%p1577_p1), 1, %s1198_s16   ;;  %p1578_p12 = scmp.ne.s32.totalorder (!%p1577_p1), %s1567_s25, 0 }
  0x81   : > { %239 = sbr.rel (%p1577_p1) target bundleno = 647 (0x287), region = 36  ;;  %s813_s12 = sshll.u32 (!%p1577_p1), %s1461_s7, 4 }
  0x82   : > { %s242_s10 = scalar_lea.sflag (!%p1577_p1), [#allocation4], %s1461_s7  ;;  %s1465_s28 = scalar_lea.vmem (!%p1577_p1), [#allocation3], %s813_s12 }
  0x88   : > { %1177 = dma.done.wait (%p1578_p12), %s242_s10, 256  }
  0x89   : > { %1179 = vsyncadd (%p1578_p12), %s242_s10, 4294967040  ;;  %p1579_p7 = scmp.ne.s32.totalorder %s1565_s23, 0 }
  0x8b   : > { %1181 = dma.done.wait (%p1579_p7), [#allocation7], 2816  }
  0x8c   : > { %1183 = vsyncadd (%p1579_p7), [#allocation7], 4294964480 }
  0x8d   : > { %1185 = dma.done.wait (%p1579_p7), [#allocation10], 768  }
  0x8e   : > { %1187 = vsyncadd (%p1579_p7), [#allocation10], 4294966528  ;;  %v994_v0 = vld [vmem:[#allocation6 + $0x40] sm:$0xff]   ;;  %v996_v2 = vld [vmem:[#allocation6 + $0x48] sm:$0xff]   ;;  %vm289_vm0 = vcmask 261120   ;;  %v1224_v20 = vmov 0.0   ;;  %v633_v44 = vlaneseq }
  0x8f   : > { %v995_v1 = vld [vmem:[#allocation6] sm:$0xff]   ;;  %851 = vmatprep.subr.bf16.mxu0 %v994_v0  ;;  %v997_v3 = vld [vmem:[#allocation6 + $0x8] sm:$0xff]   ;;  %v998_v4 = vld [vmem:[#allocation6 + $0x50] sm:$0xff]   ;;  %290 = vst.msk [vmem:[#allocation2] sm:$0xff] %vm289_vm0, %v1224_v20  ;;  %vm513_vm1 = vcmask 64512   ;;  %v1225_v24 = vmov 0  }
  0x90   : > { %852 = vmatpush3.bf16.msra.mxu0 %v995_v1  ;;  %v999_v5 = vld [vmem:[#allocation6 + $0x10] sm:$0xff]   ;;  %v1000_v6 = vld [vmem:[#allocation6 + $0x58] sm:$0xff]   ;;  %v1002_v8 = vld [vmem:[#allocation6 + $0x60] sm:$0xff]   ;;  %993 = vset.pattern.permute.xlu1 %v1225_v24  ;;  %v634_v48 = vand.u32 127, %v633_v44  ;;  %s817_s23 = sshll.u32 %s1461_s7, 3  ;;  %s850_s25 = sshll.u32 %s1206_s18, 7 }
  0x91   : > { %853 = vmatprep.subr.bf16.mxu0 %v996_v2  ;;  %v1001_v7 = vld [vmem:[#allocation6 + $0x18] sm:$0xff]   ;;  %v1003_v9 = vld [vmem:[#allocation6 + $0x20] sm:$0xff]   ;;  %v1004_v10 = vld [vmem:[#allocation6 + $0x68] sm:$0xff]   ;;  %992 = vset.pattern.permute.xlu0 %v1225_v24  ;;  %s281_s27 = scalar_lea.vmem [#allocation11], %s817_s23  ;;  %vm670_vm9 = vcmask 257024   ;;  %s1504_s5 = scalar_lea.hbm %s1559_s4, %s850_s25 }
  0x92   : > { %v293_v11 = vld [vmem:[%s1465_s28 + $0x8] sm:$0xff]  ;;  %v1006_v14 = vld [vmem:[#allocation6 + $0x70] sm:$0xff]   ;;  %v470_v21 = vld [vmem:[#allocation8] sm:$0xff]  ;;  %vm644_vm2 = vcmp.ge.s32.totalorder %v634_v48, 1  ;;  %vm645_vm3 = vcmp.lt.s32.totalorder %v634_v48, 5  ;;  %vm636_vm4 = vcmp.lt.s32.totalorder %v634_v48, 1 }
  0x93   : > { %v295_v12 = vpack.c.bf16 %v293_v11, %v293_v11  ;;  %v1005_v13 = vld [vmem:[#allocation6 + $0x28] sm:$0xff]   ;;  %v1007_v15 = vld [vmem:[#allocation6 + $0x30] sm:$0xff]   ;;  %v1008_v16 = vld [vmem:[#allocation6 + $0x78] sm:$0xff]   ;;  %882 = vmatprep.mubr.msk.f32.mxu1 %vm513_vm1, %v470_v21  ;;  %vm653_vm6 = vcmp.ge.s32.totalorder %v634_v48, 5  ;;  %vm654_vm7 = vcmp.lt.s32.totalorder %v634_v48, 21  ;;  %s687_s21 = sshll.u32 %s281_s27, 4  ;;  %s1506_s21 = int_to_ptr.vmem [resolvable:$true] %s687_s21 }
  0x94   : > { %854 = vmatpush3.bf16.msra.mxu0 %v997_v3  ;;  %v1009_v17 = vld [vmem:[#allocation6 + $0x38] sm:$0xff]   ;;  %v292_v18 = vld [vmem:[%s1465_s28] sm:$0xff]  ;;  %v480_v25 = vld [vmem:[#allocation9 + $0x18] sm:$0xff]  ;;  %s674_s18 = scalar_lea.sflag [#allocation5], %s1461_s7  ;;  %s1124_s30 = scalar_lea.vmem %s1506_s21, 128 }
  0x95   : > { %855 = vmatprep.subr.bf16.mxu0 %v998_v4  ;;  %456 = vmatprep.mubr.bf16.mxu0 %v295_v12  ;;  %v294_v19 = vpack.c.bf16 %v292_v18, %v292_v18  ;;  %v479_v22 = vld [vmem:[#allocation9 + $0x10] sm:$0xff]  ;;  %v477_v23 = vld [vmem:[#allocation9] sm:$0xff]  ;;  %v478_v26 = vld [vmem:[#allocation9 + $0x8] sm:$0xff]  ;;  %p1125_p13 = scmp.ne.s32.totalorder %s1506_s21, %s1124_s30  ;;  %s1226_s11 = smov [#allocation11]  }
  0x96   : > { %495 = vperm.xlu1 %993, %v479_v22   ;;  %485 = vperm.xlu0 %992, %v477_v23   ;;  %v482_v27 = vld [vmem:[#allocation9 + $0x28] sm:$0xff]  ;;  %v481_v28 = vld [vmem:[#allocation9 + $0x20] sm:$0xff]  ;;  %v471_v37 = vld [vmem:[#allocation8 + $0x8] sm:$0xff]  ;;  %s1128_s22 = sshll.u32 %s1226_s11, 4  ;;  %s1129_s22 = int_to_ptr.vmem [resolvable:$false] %s1128_s22 }
  0x97   : > { %v291_v30 = vld [vmem:[#allocation2] sm:$0xff]  ;;  %v472_v38 = vld [vmem:[#allocation8 + $0x10] sm:$0xff]  ;;  %v474_v40 = vld [vmem:[#allocation8 + $0x20] sm:$0xff]  ;;  %p1126_p6 = pnand %p1125_p13, %p1408_p3  ;;  %s1130_s13 = scalar_lea.vmem %s1129_s22, 256 }
  0x98   : > { %856 = vmatpush3.bf16.msra.mxu0 %v999_v5  ;;  %v473_v39 = vld [vmem:[#allocation8 + $0x18] sm:$0xff]  ;;  %v475_v41 = vld [vmem:[#allocation8 + $0x28] sm:$0xff]  ;;  %vm1489_vm5 = vmand %vm644_vm2, %vm645_vm3  ;;  %p1131_p11 = scmp.lt.s32.totalorder %s1506_s21, %s1129_s22  ;;  %p1132_p5 = scmp.lt.s32.totalorder %s1130_s13, %s1124_s30 }
  0x99   : > { %857 = vmatprep.subr.bf16.mxu0 %v1000_v6  ;;  %vm655_vm8 = vmand %vm653_vm6, %vm654_vm7  ;;  %p1127_p10 = pneg %p1126_p6 }
  0x9a   : > { %500 = vperm.xlu1 %993, %v480_v25   ;;  %490 = vperm.xlu0 %992, %v478_v26   ;;  %p1133_p9 = por %p1132_p5, %p1131_p11 }
  0x9c   : > { %858 = vmatpush3.bf16.msra.mxu0 %v1001_v7  ;;  %p1134_p0 = pnand %p1133_p9, %p1127_p10 }
  0x9d   : > { %859 = vmatprep.subr.bf16.mxu0 %v1002_v8 }
  0x9e   : > { %510 = vperm.xlu1 %993, %v482_v27   ;;  %505 = vperm.xlu0 %992, %v481_v28  }
  0xa0   : > { %860 = vmatpush3.bf16.msra.mxu0 %v1003_v9 }
  0xa1   : > { %861 = vmatprep.subr.bf16.mxu0 %v1004_v10 }
  0xa4   : > { %862 = vmatpush3.bf16.msra.mxu0 %v1005_v13 }
  0xa5   : > { %863 = vmatprep.subr.bf16.mxu0 %v1006_v14 }
  0xa8   : > { %864 = vmatpush3.bf16.msra.mxu0 %v1007_v15 }
  0xa9   : > { %865 = vmatprep.subr.bf16.mxu0 %v1008_v16 }
  0xac   : > { %866 = vmatpush3.bf16.msra.mxu0 %v1009_v17 }
  0xaf   : > { %457 = vmatmul.mubr.bf16.vlgmr.msra.gmra.mrb[0].mxu0 %v294_v19 }
 0x115   : > { %v486_v42 = vpop.permute.xlu0 %485  ;;  %v496_v43 = vpop.permute.xlu1 %495 }
 0x119   : > { %v491_v45 = vpop.permute.xlu0 %490  ;;  %v501_v50 = vpop.permute.xlu1 %500 }
 0x11d   : > { %v511_v60 = vpop.permute.xlu1 %510  ;;  %v506_v0 = vpop.permute.xlu0 %505 }
 0x182   : > { %v867_v29 = vpop.f32.mrb[0].mxu0 }
 0x183   : > { %v868_v31 = vpop.f32.mrb[1].mxu0 }
 0x184   : > { %v869_v32 = vadd.f32 %v868_v31, %v867_v29  ;;  %v870_v33 = vpop.f32.mrb[2].mxu0 }
 0x185   : > { %v871_v34 = vpop.f32.mrb[3].mxu0 }
 0x186   : > { %v464_v35 = vadd.f32 %v869_v32, %v291_v30 }
 0x188   : > { %466 = vst.msk [vmem:[#allocation2] sm:$0xff] %vm289_vm0, %v464_v35 }
 0x18f   : > { %v476_v36 = vld [vmem:[#allocation2] sm:$0xff] }
 0x190   : > { %880 = vmatprep.subr.mxu1 %v476_v36 }
 0x191   : > { %881 = vmatpush3.msra.mxu1 %v476_v36 }
 0x192   : > { %883 = vmatmul.mubr.msk.f32.vlgmr.msra.gmra.mrb[0].mxu1 %vm513_vm1, %v471_v37 }
 0x193   : > { %885 = vmatprep.mubr.msk.f32.mxu1 %vm513_vm1, %v472_v38 }
 0x196   : > { %886 = vmatmul.mubr.msk.f32.gmra.mrb[2].mxu1 %vm513_vm1, %v473_v39 }
 0x197   : > { %888 = vmatprep.mubr.msk.f32.mxu1 %vm513_vm1, %v474_v40 }
 0x19a   : > { %889 = vmatmul.mubr.msk.f32.gmra.mrb[4].mxu1 %vm513_vm1, %v475_v41 }
 0x265   : > { %v884_v46 = vpop.f32.mrb[0].mxu1 }
 0x266   : > { %v604_v47 = vadd.f32 %v884_v46, %v491_v45  ;;  %v598_v49 = vpop.f32.mrb[1].mxu1 }
 0x267   : > { %v599_v51 = vadd.f32 %v598_v49, %v486_v42 }
 0x268   : > { %v628_v53 = vmax.f32 %v604_v47, 0.0 }
 0x269   : > { %v887_v52 = vpop.f32.mrb[2].mxu1  ;;  %v627_v56 = vmax.f32 %v599_v51, 0.0 }
 0x26a   : > { %v614_v54 = vadd.f32 %v887_v52, %v501_v50  ;;  %v608_v55 = vpop.f32.mrb[3].mxu1  ;;  %v641_v63 = vsel %vm636_vm4, %v628_v53, 0.0 }
 0x26b   : > { %v609_v58 = vadd.f32 %v608_v55, %v496_v43  ;;  %v640_v4 = vsel %vm636_vm4, %v627_v56, 0.0 }
 0x26c   : > { %v630_v59 = vmax.f32 %v614_v54, 0.0 }
 0x26d   : > { %v629_v61 = vmax.f32 %v609_v58, 0.0  ;;  %v890_v62 = vpop.f32.mrb[4].mxu1 }
 0x26e   : > { %v650_v1 = vsel %vm1489_vm5, %v630_v59, 0.0  ;;  %v624_v2 = vadd.f32 %v890_v62, %v511_v60  ;;  %v618_v3 = vpop.f32.mrb[5].mxu1 }
 0x26f   : > { %v652_v5 = vadd.f32 %v650_v1, %v641_v63  ;;  %v649_v6 = vsel %vm1489_vm5, %v629_v61, 0.0  ;;  %v619_v7 = vadd.f32 %v618_v3, %v506_v0 }
 0x270   : > { %v651_v8 = vadd.f32 %v649_v6, %v640_v4  ;;  %v632_v9 = vmax.f32 %v624_v2, 0.0 }
 0x271   : > { %v631_v10 = vmax.f32 %v619_v7, 0.0 }
 0x272   : > { %v659_v11 = vsel %vm655_vm8, %v632_v9, 0.0 }
 0x273   : > { %v661_v12 = vadd.f32 %v659_v11, %v652_v5  ;;  %v658_v13 = vsel %vm655_vm8, %v631_v10, 0.0 }
 0x274   : > { %v660_v14 = vadd.f32 %v658_v13, %v651_v8 }
 0x275   : > { %v849_v15 = vpack.c.bf16 %v661_v12, %v661_v12 }
 0x276   : > { %v848_v16 = vpack.c.bf16 %v660_v14, %v660_v14 }
 0x277   : > { %672 = vst.msk [vmem:[%s281_s27 + $0x4] sm:$0xf] %vm670_vm9, %v849_v15 }
 0x278   : > { %671 = vst.msk [vmem:[%s281_s27] sm:$0xf] %vm670_vm9, %v848_v16 }
 0x279   : > { %1137 = shalt.err (!%p1134_p0)
}
 0x27a   : > { %s1138_s14 = scalar_lea.hbm %s1504_s5, 128  ;;  %s1142_s10 = scalar_lea.hbm %s1559_s4, 256 }
 0x27b   : > { %p1139_p4 = scmp.ne.s32.totalorder %s1504_s5, %s1138_s14  ;;  %p1143_p1 = scmp.lt.u32.totalorder %s1504_s5, %s1559_s4 }
 0x27c   : > { %p1144_p12 = scmp.lt.u32.totalorder %s1142_s10, %s1138_s14  ;;  %p1146_p13 = scmp.lt.u32.totalorder %s1138_s14, %s1504_s5 }
 0x27d   : > { %p1140_p8 = pnand %p1139_p4, %p1408_p3 }
 0x27e   : > { %p1145_p7 = por %p1144_p12, %p1143_p1 }
 0x27f   : > { %p1141_p2 = pneg %p1140_p8 }
 0x280   : > { %p1147_p6 = por %p1146_p13, %p1145_p7 }
 0x282   : > { %p1148_p10 = pnand %p1147_p6, %p1141_p2 }
 0x284   : > { %1151 = shalt.err (!%p1148_p10)
}
 0x285   : > { %s1227_s25 = smov 64   ;;  %s1228_s27 = smov 4  }
 0x286   : > { %905 = dma.vmem_to_hbm [thread:$0]  (%p1408_p3), %s1506_s21, 128, %s1504_s5, %s674_s18, %s1227_s25, %s1227_s25, %s1228_s27  }
 0x287 PF: > { %s702_s29 = sand.u32 1, %s1194_s15   ;;  %p1582_p11 = scmp.ne.s32.totalorder %s1568_s26, 0 }
 0x288   : > { %p1583_p5 = scmp.ge.s32.totalorder %s1214_s20, 2  ;;  %s703_s6 = scalar_lea.sflag [#allocation5], %s702_s29 }
 0x28a   : > { %p922_p9 = pnand %p1583_p5, %p1582_p11 }
 0x28c   : > { %1189 = dma.done.wait (!%p922_p9), %s703_s6, 128  }
 0x28d   : > { %1191 = vsyncadd (!%p922_p9), %s703_s6, 4294967168  ;;  %s22_s20 = sadd.s32 1, %s1214_s20   ;;  %s1584_s15 = smov %s1198_s16 }
 0x28e   : > { %p19_p0 = scmp.ge.s32.totalorder %s22_s20, 4   ;;  %s1585_s16 = smov %s1202_s17 }
 0x28f   : > { %s1586_s17 = smov %s1417_s9  ;;  %s1587_s18 = smov %s1210_s19 }
 0x290   : > { %s1588_s19 = smov %s1590_s1  ;;  %21 = sbr.rel (!%p19_p0) target bundleno = 10 (0xa), region = 102 }
 0x297   :  { %708 = vsyncpa [#allocation4], 1 }
 0x298   :  { %710 = vsyncpa [#allocation4 + $0x1], 1 }
 0x299   :  { %711 = vsyncpa [#allocation7], 1 }
 0x29a   :  { %712 = vsyncpa [#allocation10], 1 }
 0x29b   :  { %713 = vsyncpa [#allocation5], 1 }
 0x29c   :  { %715 = vsyncpa [#allocation5 + $0x1], 1 }

</bundles_post_ra>
